<compile_context>
chip_gen: v6e
topology: v6e:2x2x1
jax: 0.10.0
libtpu: 0.0.40
codegen_flags: <defaults>
</compile_context>

<pallas_src>
import math
import functools

import jax
import jax.numpy as jnp
from jax.experimental import pallas as pl
from jax.experimental.pallas import tpu as pltpu


def _mha_kernel(x_ref, wq_ref, wk_ref, wv_ref, wo_ref, bo_ref, gamma_ref, beta_ref,
                out_ref, *, eps, inv_sqrt_k):
    TB, F, D = x_ref.shape
    H, _, K = wq_ref.shape
    V = wv_ref.shape[-1]
    mm_dtype = wq_ref.dtype            # MXU operand dtype (f32 at demo dims, bf16 production)

    # One (TB*F, D) activation slab for the whole block: each projection is a single big
    # MXU matmul instead of TB*H tiny pushes. (Reshape is sublane-tile aligned for F % 8 == 0.)
    x2d = x_ref[...].reshape(TB * F, D)
    xm = x2d.astype(mm_dtype)

    # Residual + output-linear bias; per-head output projections accumulate into this,
    # so there is no (H, F, D) intermediate and no cross-head reduction afterwards.
    r = x2d + bo_ref[...]                               # (TB*F, D) float32

    # Static unroll over heads: H is a small hyper-parameter (module default is 1).
    # Each iteration's temporaries die within the iteration; for very large H switch
    # to lax.fori_loop to bound live ranges.
    for h in range(H):
        q = jnp.dot(xm, wq_ref[h], preferred_element_type=jnp.float32)   # (TB*F, K)
        k = jnp.dot(xm, wk_ref[h], preferred_element_type=jnp.float32)   # (TB*F, K)
        v = jnp.dot(xm, wv_ref[h], preferred_element_type=jnp.float32)   # (TB*F, V)

        # Per-batch views for attention; cast so the scores matmul also runs with
        # mm_dtype operands (f32 accumulation kept throughout).
        qb = q.reshape(TB, F, K).astype(mm_dtype)
        kb = k.reshape(TB, F, K).astype(mm_dtype)
        vb = v.reshape(TB, F, V).astype(mm_dtype)

        # Scaled dot-product attention, batched over TB.  Contraction is on the K axis
        # directly (natural dot_general operand/output order: no transposes anywhere).
        s = jnp.einsum('tqk,tsk->tqs', qb, kb,
                       preferred_element_type=jnp.float32) * inv_sqrt_k  # (TB, F, F) f32
        s = s - jnp.max(s, axis=-1, keepdims=True)
        e = jnp.exp(s)
        # approx reciprocal -> EUP slot; denominator > 0 after max-subtraction.
        attn = e * pl.reciprocal(jnp.sum(e, axis=-1, keepdims=True), approx=True)

        o = jnp.einsum('tqs,tsv->tqv', attn.astype(mm_dtype), vb,
                       preferred_element_type=jnp.float32)               # (TB, F, V) f32

        # Head-sum fused into the output projection: r += o_h @ Wo_h (concat(heads) @ Wo).
        r = r + jnp.dot(o.reshape(TB * F, V).astype(mm_dtype), wo_ref[h],
                        preferred_element_type=jnp.float32)              # (TB*F, D)

    # LayerNorm over the feature dim (biased variance, eps = 1e-5); residual already in r.
    mean = jnp.mean(r, axis=-1, keepdims=True)
    cent = r - mean
    var = jnp.mean(cent * cent, axis=-1, keepdims=True)
    y = cent * jax.lax.rsqrt(var + eps) * gamma_ref[...] + beta_ref[...]
    out_ref[...] = y.reshape(TB, F, D).astype(out_ref.dtype)


def _pick_batch_block(B, F, D, H, K, V, weight_bytes, vmem_budget_bytes=24 * 1024 * 1024):
    """VMEM-budgeted batch block: block I/O + live intermediates + 2x weights <= budget."""
    f32b = 4
    io_bytes = 2 * 2 * F * D * f32b                    # x block + out block, double-buffered
    live_bytes = f32b * F * (
        2 * D                                           # x2d / residual accumulator
        + 2 * (2 * K + V)                               # q, k, v (+ mm-dtype casts, bound)
        + 2 * F                                         # scores + exp
        + 2 * V                                         # o (+ cast)
        + 2 * D)                                        # LayerNorm temps / output cast
    per_b = io_bytes + live_bytes
    avail = max(vmem_budget_bytes - 2 * weight_bytes, per_b)
    tb_cap = max(1, avail // per_b)
    # Keep several grid steps: megacore sharding + DMA/compute overlap.
    min_steps = 4 if B >= 8 else (2 if B >= 2 else 1)
    tb = int(min(B, tb_cap, max(1, B // min_steps)))
    while B % tb:
        tb -= 1
    return tb, per_b


def multi_head_attention(x, wq, wk, wv, wo, bo, gamma, beta, *,
                         num_heads, key_size, value_size=None, eps=1e-5,
                         batch_block=None, matmul_dtype="auto"):
    B, F, D = x.shape
    H, K = num_heads, key_size
    V = key_size if value_size is None else value_size
    assert wq.shape == (D, H * K) and wk.shape == (D, H * K)
    assert wv.shape == (D, H * V) and wo.shape == (H * V, D)

    # Head-major weight layout, prepared once in the wrapper (outside the kernel).
    wq_h = jnp.transpose(wq.reshape(D, H, K), (1, 0, 2))    # (H, D, K)
    wk_h = jnp.transpose(wk.reshape(D, H, K), (1, 0, 2))    # (H, D, K)
    wv_h = jnp.transpose(wv.reshape(D, H, V), (1, 0, 2))    # (H, D, V)
    wo_h = wo.reshape(H, V, D)                               # (H, V, D)

    # bf16 MXU operands for production-sized dims; f32 for tiny (demo) dims.
    if matmul_dtype == "auto":
        matmul_dtype = jnp.bfloat16 if (D >= 128 and K >= 128 and V >= 128) else jnp.float32
    mm = jnp.dtype(matmul_dtype)
    wq_h, wk_h, wv_h, wo_h = (w.astype(mm) for w in (wq_h, wk_h, wv_h, wo_h))

    bo2 = bo.reshape(1, D)
    gamma2 = gamma.reshape(1, D)
    beta2 = beta.reshape(1, D)

    weight_bytes = mm.itemsize * H * D * (2 * K + 2 * V) + 3 * D * 4

    if batch_block is None:
        batch_block, per_b = _pick_batch_block(B, F, D, H, K, V, weight_bytes)
    else:
        _, per_b = _pick_batch_block(B, F, D, H, K, V, weight_bytes)
    TB = batch_block
    assert B % TB == 0, "batch must be divisible by batch_block"

    # Scoped-VMEM limit sized from the block shapes (safe on v5e/v6e/v7x physical VMEM).
    vmem_needed = 2 * weight_bytes + TB * per_b + (2 << 20)
    vmem_limit = int(min(max(2 * vmem_needed, 32 * 1024 * 1024), 48 * 1024 * 1024))

    flops = 2 * B * F * (H * D * (2 * K + V)      # q/k/v projections
                         + H * F * (K + V)        # scores + attn@v
                         + H * V * D)             # output projection
    transcendentals = B * H * F * F + B * H * F + B * F   # exp + softmax recip + rsqrt
    bytes_accessed = (2 * B * F * D * 4           # x in + y out
                      + weight_bytes)
    ce = pl.CostEstimate(flops=int(flops), transcendentals=int(transcendentals),
                         bytes_accessed=int(bytes_accessed))

    kernel = functools.partial(_mha_kernel, eps=eps, inv_sqrt_k=1.0 / math.sqrt(K))
    const = lambda nd: (lambda i: (0,) * nd)

    return pl.pallas_call(
        kernel,
        out_shape=jax.ShapeDtypeStruct((B, F, D), x.dtype),
        grid_spec=pltpu.PrefetchScalarGridSpec(
            num_scalar_prefetch=0,
            grid=(B // TB,),
            in_specs=[
                pl.BlockSpec((TB, F, D), lambda i: (i, 0, 0)),   # x
                pl.BlockSpec((H, D, K), const(3)),               # Wq (head-major)
                pl.BlockSpec((H, D, K), const(3)),               # Wk (head-major)
                pl.BlockSpec((H, D, V), const(3)),               # Wv (head-major)
                pl.BlockSpec((H, V, D), const(3)),               # Wo (head-major)
                pl.BlockSpec((1, D), const(2)),                  # bo
                pl.BlockSpec((1, D), const(2)),                  # LayerNorm gamma
                pl.BlockSpec((1, D), const(2)),                  # LayerNorm beta
            ],
            out_specs=pl.BlockSpec((TB, F, D), lambda i: (i, 0, 0)),
        ),
        compiler_params=pltpu.CompilerParams(
            dimension_semantics=("parallel",),
            vmem_limit_bytes=vmem_limit),
        cost_estimate=ce,
    )(x, wq_h, wk_h, wv_h, wo_h, bo2, gamma2, beta2)


if __name__ == "__main__":
    # Small shapes consistent with the module's forward: x is (batch, frames, input_size).
    B, F, D = 2, 8, 32
    num_heads, key_size = 2, 16
    value_size = key_size        # value_size=None -> key_size in the module

    key = jax.random.PRNGKey(0)
    kx, kq, kk, kv, ko, kb = jax.random.split(key, 6)

    x = jax.random.normal(kx, (B, F, D), dtype=jnp.float32)

    # Deterministic synthetic parameters (nn.Linear weights stored transposed: (in, out)).
    scale_in = 1.0 / math.sqrt(D)
    wq = jax.random.uniform(kq, (D, num_heads * key_size), jnp.float32, -scale_in, scale_in)
    wk = jax.random.uniform(kk, (D, num_heads * key_size), jnp.float32, -scale_in, scale_in)
    wv = jax.random.uniform(kv, (D, num_heads * value_size), jnp.float32, -scale_in, scale_in)

    scale_out = 1.0 / math.sqrt(num_heads * value_size)
    wo = jax.random.uniform(ko, (num_heads * value_size, D), jnp.float32, -scale_out, scale_out)
    bo = jax.random.uniform(kb, (D,), jnp.float32, -scale_out, scale_out)

    gamma = jnp.ones((D,), jnp.float32)   # nn.LayerNorm default init
    beta = jnp.zeros((D,), jnp.float32)

    y = multi_head_attention(x, wq, wk, wv, wo, bo, gamma, beta,
                             num_heads=num_heads, key_size=key_size,
                             value_size=value_size)
    jax.block_until_ready(y)

    # Pure-JAX reference (same math as the PyTorch forward, eval mode).
    q = (x @ wq).reshape(B, F, num_heads, key_size)
    k = (x @ wk).reshape(B, F, num_heads, key_size)
    v = (x @ wv).reshape(B, F, num_heads, value_size)
    qh = jnp.swapaxes(q, 1, 2)
    kh = jnp.swapaxes(k, 1, 2)
    vh = jnp.swapaxes(v, 1, 2)
    att = jax.nn.softmax(jnp.einsum('bhqd,bhkd->bhqk', qh, kh) / math.sqrt(key_size), axis=-1)
    o = jnp.einsum('bhqk,bhkd->bhqd', att, vh)
    o = jnp.swapaxes(o, 1, 2).reshape(B, F, num_heads * value_size) @ wo + bo
    r = o + x
    mean = r.mean(-1, keepdims=True)
    var = ((r - mean) ** 2).mean(-1, keepdims=True)
    ref = (r - mean) / jnp.sqrt(var + 1e-5) * gamma + beta

    # Tolerance relaxed slightly (approx EUP reciprocal in the softmax denominator).
    assert jnp.allclose(y, ref, atol=2e-3, rtol=2e-3), "mismatch vs reference"
    print("KERNEL_OK")
</pallas_src>

<mosaic_0001>
module attributes {stable_mosaic.version = 11 : i64} {
  func.func @_mha_kernel(%arg0: i32, %arg1: memref<1x8x32xf32, #tpu.memory_space<vmem>>, %arg2: memref<2x32x16xf32, #tpu.memory_space<vmem>>, %arg3: memref<2x32x16xf32, #tpu.memory_space<vmem>>, %arg4: memref<2x32x16xf32, #tpu.memory_space<vmem>>, %arg5: memref<2x16x32xf32, #tpu.memory_space<vmem>>, %arg6: memref<1x32xf32, #tpu.memory_space<vmem>>, %arg7: memref<1x32xf32, #tpu.memory_space<vmem>>, %arg8: memref<1x32xf32, #tpu.memory_space<vmem>>, %arg9: memref<1x8x32xf32, #tpu.memory_space<vmem>>) attributes {dimension_semantics = [#tpu.dimension_semantics<parallel>], iteration_bounds = array<i64: 2>, scalar_prefetch = 0 : i64, scratch_operands = 0 : i64, tpu.core_type = #tpu.core_type<tc>, window_params = [{transform_indices = @transform_0, window_bounds = array<i64: 1, 8, 32>}, {pipeline_mode = #tpu.pipeline_mode<synchronous>, transform_indices = @transform_1, window_bounds = array<i64: 2, 32, 16>}, {pipeline_mode = #tpu.pipeline_mode<synchronous>, transform_indices = @transform_2, window_bounds = array<i64: 2, 32, 16>}, {pipeline_mode = #tpu.pipeline_mode<synchronous>, transform_indices = @transform_3, window_bounds = array<i64: 2, 32, 16>}, {pipeline_mode = #tpu.pipeline_mode<synchronous>, transform_indices = @transform_4, window_bounds = array<i64: 2, 16, 32>}, {pipeline_mode = #tpu.pipeline_mode<synchronous>, transform_indices = @transform_5, window_bounds = array<i64: 1, 32>}, {pipeline_mode = #tpu.pipeline_mode<synchronous>, transform_indices = @transform_6, window_bounds = array<i64: 1, 32>}, {pipeline_mode = #tpu.pipeline_mode<synchronous>, transform_indices = @transform_7, window_bounds = array<i64: 1, 32>}, {transform_indices = @transform_8, window_bounds = array<i64: 1, 8, 32>}]} {
    %c0 = arith.constant 0 : index
    %c0_0 = arith.constant 0 : index
    %c0_1 = arith.constant 0 : index
    %0 = vector.load %arg1[%c0, %c0_0, %c0_1] : memref<1x8x32xf32, #tpu.memory_space<vmem>>, vector<1x8x32xf32>
    %1 = vector.shape_cast %0 : vector<1x8x32xf32> to vector<8x32xf32>
    %c0_2 = arith.constant 0 : index
    %c0_3 = arith.constant 0 : index
    %2 = vector.load %arg6[%c0_2, %c0_3] : memref<1x32xf32, #tpu.memory_space<vmem>>, vector<1x32xf32>
    %3 = vector.broadcast %2 : vector<1x32xf32> to vector<8x32xf32>
    %4 = arith.addf %1, %3 : vector<8x32xf32>
    %c0_4 = arith.constant 0 : index
    %c0_5 = arith.constant 0 : index
    %c0_6 = arith.constant 0 : index
    %5 = vector.load %arg2[%c0_4, %c0_5, %c0_6] : memref<2x32x16xf32, #tpu.memory_space<vmem>>, vector<1x32x16xf32>
    %6 = vector.shape_cast %5 : vector<1x32x16xf32> to vector<32x16xf32>
    %cst = arith.constant dense<0.000000e+00> : vector<8x16xf32>
    %7 = tpu.matmul %1, %6, %cst {dimension_numbers = #tpu.dot_dimension_numbers<[1], [0], [0], [1], [0, 0, 1, 1], [], []>} : vector<8x32xf32>, vector<32x16xf32>, vector<8x16xf32> -> vector<8x16xf32>
    %c0_7 = arith.constant 0 : index
    %c0_8 = arith.constant 0 : index
    %c0_9 = arith.constant 0 : index
    %8 = vector.load %arg3[%c0_7, %c0_8, %c0_9] : memref<2x32x16xf32, #tpu.memory_space<vmem>>, vector<1x32x16xf32>
    %9 = vector.shape_cast %8 : vector<1x32x16xf32> to vector<32x16xf32>
    %cst_10 = arith.constant dense<0.000000e+00> : vector<8x16xf32>
    %10 = tpu.matmul %1, %9, %cst_10 {dimension_numbers = #tpu.dot_dimension_numbers<[1], [0], [0], [1], [0, 0, 1, 1], [], []>} : vector<8x32xf32>, vector<32x16xf32>, vector<8x16xf32> -> vector<8x16xf32>
    %c0_11 = arith.constant 0 : index
    %c0_12 = arith.constant 0 : index
    %c0_13 = arith.constant 0 : index
    %11 = vector.load %arg4[%c0_11, %c0_12, %c0_13] : memref<2x32x16xf32, #tpu.memory_space<vmem>>, vector<1x32x16xf32>
    %12 = vector.shape_cast %11 : vector<1x32x16xf32> to vector<32x16xf32>
    %cst_14 = arith.constant dense<0.000000e+00> : vector<8x16xf32>
    %13 = tpu.matmul %1, %12, %cst_14 {dimension_numbers = #tpu.dot_dimension_numbers<[1], [0], [0], [1], [0, 0, 1, 1], [], []>} : vector<8x32xf32>, vector<32x16xf32>, vector<8x16xf32> -> vector<8x16xf32>
    %14 = vector.shape_cast %7 : vector<8x16xf32> to vector<1x8x16xf32>
    %15 = vector.shape_cast %10 : vector<8x16xf32> to vector<1x8x16xf32>
    %16 = vector.shape_cast %13 : vector<8x16xf32> to vector<1x8x16xf32>
    "tpu.trace_start"() <{level = 10 : i32, message = "tqk,tsk->tqs"}> : () -> ()
    %cst_15 = arith.constant dense<0.000000e+00> : vector<1x8x8xf32>
    %17 = tpu.matmul %14, %15, %cst_15 {dimension_numbers = #tpu.dot_dimension_numbers<[2], [2], [1], [1], [0, 0, 0, 1, 1, 1], [0], [0]>} : vector<1x8x16xf32>, vector<1x8x16xf32>, vector<1x8x8xf32> -> vector<1x8x8xf32>
    "tpu.trace_stop"() : () -> ()
    %cst_16 = arith.constant 2.500000e-01 : f32
    %18 = vector.broadcast %cst_16 : f32 to vector<1x8x8xf32>
    %19 = arith.mulf %17, %18 : vector<1x8x8xf32>
    %cst_17 = arith.constant dense<0xFF800000> : vector<1x8xf32>
    %20 = vector.multi_reduction <maximumf>, %19, %cst_17 [2] : vector<1x8x8xf32> to vector<1x8xf32>
    %21 = vector.shape_cast %20 : vector<1x8xf32> to vector<1x8x1xf32>
    %22 = vector.broadcast %21 : vector<1x8x1xf32> to vector<1x8x8xf32>
    %23 = arith.subf %19, %22 : vector<1x8x8xf32>
    %24 = math.exp %23 : vector<1x8x8xf32>
    %cst_18 = arith.constant dense<0.000000e+00> : vector<1x8xf32>
    %25 = vector.multi_reduction <add>, %24, %cst_18 [2] : vector<1x8x8xf32> to vector<1x8xf32>
    %26 = vector.shape_cast %25 : vector<1x8xf32> to vector<1x8x1xf32>
    %27 = tpu.reciprocal %26 {approx = true} : vector<1x8x1xf32> -> vector<1x8x1xf32>
    %28 = vector.broadcast %27 : vector<1x8x1xf32> to vector<1x8x8xf32>
    %29 = arith.mulf %24, %28 : vector<1x8x8xf32>
    "tpu.trace_start"() <{level = 10 : i32, message = "tqs,tsv->tqv"}> : () -> ()
    %cst_19 = arith.constant dense<0.000000e+00> : vector<1x8x16xf32>
    %30 = tpu.matmul %29, %16, %cst_19 {dimension_numbers = #tpu.dot_dimension_numbers<[2], [1], [1], [2], [0, 0, 0, 1, 1, 2], [0], [0]>} : vector<1x8x8xf32>, vector<1x8x16xf32>, vector<1x8x16xf32> -> vector<1x8x16xf32>
    "tpu.trace_stop"() : () -> ()
    %31 = vector.shape_cast %30 : vector<1x8x16xf32> to vector<8x16xf32>
    %c0_20 = arith.constant 0 : index
    %c0_21 = arith.constant 0 : index
    %c0_22 = arith.constant 0 : index
    %32 = vector.load %arg5[%c0_20, %c0_21, %c0_22] : memref<2x16x32xf32, #tpu.memory_space<vmem>>, vector<1x16x32xf32>
    %33 = vector.shape_cast %32 : vector<1x16x32xf32> to vector<16x32xf32>
    %cst_23 = arith.constant dense<0.000000e+00> : vector<8x32xf32>
    %34 = tpu.matmul %31, %33, %cst_23 {dimension_numbers = #tpu.dot_dimension_numbers<[1], [0], [0], [1], [0, 0, 1, 1], [], []>} : vector<8x16xf32>, vector<16x32xf32>, vector<8x32xf32> -> vector<8x32xf32>
    %35 = arith.addf %4, %34 : vector<8x32xf32>
    %c1 = arith.constant 1 : index
    %c0_24 = arith.constant 0 : index
    %c0_25 = arith.constant 0 : index
    %36 = vector.load %arg2[%c1, %c0_24, %c0_25] : memref<2x32x16xf32, #tpu.memory_space<vmem>>, vector<1x32x16xf32>
    %37 = vector.shape_cast %36 : vector<1x32x16xf32> to vector<32x16xf32>
    %cst_26 = arith.constant dense<0.000000e+00> : vector<8x16xf32>
    %38 = tpu.matmul %1, %37, %cst_26 {dimension_numbers = #tpu.dot_dimension_numbers<[1], [0], [0], [1], [0, 0, 1, 1], [], []>} : vector<8x32xf32>, vector<32x16xf32>, vector<8x16xf32> -> vector<8x16xf32>
    %c1_27 = arith.constant 1 : index
    %c0_28 = arith.constant 0 : index
    %c0_29 = arith.constant 0 : index
    %39 = vector.load %arg3[%c1_27, %c0_28, %c0_29] : memref<2x32x16xf32, #tpu.memory_space<vmem>>, vector<1x32x16xf32>
    %40 = vector.shape_cast %39 : vector<1x32x16xf32> to vector<32x16xf32>
    %cst_30 = arith.constant dense<0.000000e+00> : vector<8x16xf32>
    %41 = tpu.matmul %1, %40, %cst_30 {dimension_numbers = #tpu.dot_dimension_numbers<[1], [0], [0], [1], [0, 0, 1, 1], [], []>} : vector<8x32xf32>, vector<32x16xf32>, vector<8x16xf32> -> vector<8x16xf32>
    %c1_31 = arith.constant 1 : index
    %c0_32 = arith.constant 0 : index
    %c0_33 = arith.constant 0 : index
    %42 = vector.load %arg4[%c1_31, %c0_32, %c0_33] : memref<2x32x16xf32, #tpu.memory_space<vmem>>, vector<1x32x16xf32>
    %43 = vector.shape_cast %42 : vector<1x32x16xf32> to vector<32x16xf32>
    %cst_34 = arith.constant dense<0.000000e+00> : vector<8x16xf32>
    %44 = tpu.matmul %1, %43, %cst_34 {dimension_numbers = #tpu.dot_dimension_numbers<[1], [0], [0], [1], [0, 0, 1, 1], [], []>} : vector<8x32xf32>, vector<32x16xf32>, vector<8x16xf32> -> vector<8x16xf32>
    %45 = vector.shape_cast %38 : vector<8x16xf32> to vector<1x8x16xf32>
    %46 = vector.shape_cast %41 : vector<8x16xf32> to vector<1x8x16xf32>
    %47 = vector.shape_cast %44 : vector<8x16xf32> to vector<1x8x16xf32>
    "tpu.trace_start"() <{level = 10 : i32, message = "tqk,tsk->tqs"}> : () -> ()
    %cst_35 = arith.constant dense<0.000000e+00> : vector<1x8x8xf32>
    %48 = tpu.matmul %45, %46, %cst_35 {dimension_numbers = #tpu.dot_dimension_numbers<[2], [2], [1], [1], [0, 0, 0, 1, 1, 1], [0], [0]>} : vector<1x8x16xf32>, vector<1x8x16xf32>, vector<1x8x8xf32> -> vector<1x8x8xf32>
    "tpu.trace_stop"() : () -> ()
    %cst_36 = arith.constant 2.500000e-01 : f32
    %49 = vector.broadcast %cst_36 : f32 to vector<1x8x8xf32>
    %50 = arith.mulf %48, %49 : vector<1x8x8xf32>
    %cst_37 = arith.constant dense<0xFF800000> : vector<1x8xf32>
    %51 = vector.multi_reduction <maximumf>, %50, %cst_37 [2] : vector<1x8x8xf32> to vector<1x8xf32>
    %52 = vector.shape_cast %51 : vector<1x8xf32> to vector<1x8x1xf32>
    %53 = vector.broadcast %52 : vector<1x8x1xf32> to vector<1x8x8xf32>
    %54 = arith.subf %50, %53 : vector<1x8x8xf32>
    %55 = math.exp %54 : vector<1x8x8xf32>
    %cst_38 = arith.constant dense<0.000000e+00> : vector<1x8xf32>
    %56 = vector.multi_reduction <add>, %55, %cst_38 [2] : vector<1x8x8xf32> to vector<1x8xf32>
    %57 = vector.shape_cast %56 : vector<1x8xf32> to vector<1x8x1xf32>
    %58 = tpu.reciprocal %57 {approx = true} : vector<1x8x1xf32> -> vector<1x8x1xf32>
    %59 = vector.broadcast %58 : vector<1x8x1xf32> to vector<1x8x8xf32>
    %60 = arith.mulf %55, %59 : vector<1x8x8xf32>
    "tpu.trace_start"() <{level = 10 : i32, message = "tqs,tsv->tqv"}> : () -> ()
    %cst_39 = arith.constant dense<0.000000e+00> : vector<1x8x16xf32>
    %61 = tpu.matmul %60, %47, %cst_39 {dimension_numbers = #tpu.dot_dimension_numbers<[2], [1], [1], [2], [0, 0, 0, 1, 1, 2], [0], [0]>} : vector<1x8x8xf32>, vector<1x8x16xf32>, vector<1x8x16xf32> -> vector<1x8x16xf32>
    "tpu.trace_stop"() : () -> ()
    %62 = vector.shape_cast %61 : vector<1x8x16xf32> to vector<8x16xf32>
    %c1_40 = arith.constant 1 : index
    %c0_41 = arith.constant 0 : index
    %c0_42 = arith.constant 0 : index
    %63 = vector.load %arg5[%c1_40, %c0_41, %c0_42] : memref<2x16x32xf32, #tpu.memory_space<vmem>>, vector<1x16x32xf32>
    %64 = vector.shape_cast %63 : vector<1x16x32xf32> to vector<16x32xf32>
    %cst_43 = arith.constant dense<0.000000e+00> : vector<8x32xf32>
    %65 = tpu.matmul %62, %64, %cst_43 {dimension_numbers = #tpu.dot_dimension_numbers<[1], [0], [0], [1], [0, 0, 1, 1], [], []>} : vector<8x16xf32>, vector<16x32xf32>, vector<8x32xf32> -> vector<8x32xf32>
    %66 = arith.addf %35, %65 : vector<8x32xf32>
    %cst_44 = arith.constant dense<0.000000e+00> : vector<8xf32>
    %67 = vector.multi_reduction <add>, %66, %cst_44 [1] : vector<8x32xf32> to vector<8xf32>
    %68 = vector.shape_cast %67 : vector<8xf32> to vector<8x1xf32>
    %cst_45 = arith.constant 3.200000e+01 : f32
    %69 = vector.broadcast %cst_45 : f32 to vector<8x1xf32>
    %70 = arith.divf %68, %69 : vector<8x1xf32>
    %71 = vector.broadcast %70 : vector<8x1xf32> to vector<8x32xf32>
    %72 = arith.subf %66, %71 : vector<8x32xf32>
    %73 = arith.mulf %72, %72 : vector<8x32xf32>
    %cst_46 = arith.constant dense<0.000000e+00> : vector<8xf32>
    %74 = vector.multi_reduction <add>, %73, %cst_46 [1] : vector<8x32xf32> to vector<8xf32>
    %75 = vector.shape_cast %74 : vector<8xf32> to vector<8x1xf32>
    %cst_47 = arith.constant 3.200000e+01 : f32
    %76 = vector.broadcast %cst_47 : f32 to vector<8x1xf32>
    %77 = arith.divf %75, %76 : vector<8x1xf32>
    %cst_48 = arith.constant 9.99999974E-6 : f32
    %78 = vector.broadcast %cst_48 : f32 to vector<8x1xf32>
    %79 = arith.addf %77, %78 : vector<8x1xf32>
    %80 = math.rsqrt %79 : vector<8x1xf32>
    %81 = vector.broadcast %80 : vector<8x1xf32> to vector<8x32xf32>
    %82 = arith.mulf %72, %81 : vector<8x32xf32>
    %c0_49 = arith.constant 0 : index
    %c0_50 = arith.constant 0 : index
    %83 = vector.load %arg7[%c0_49, %c0_50] : memref<1x32xf32, #tpu.memory_space<vmem>>, vector<1x32xf32>
    %84 = vector.broadcast %83 : vector<1x32xf32> to vector<8x32xf32>
    %85 = arith.mulf %82, %84 : vector<8x32xf32>
    %c0_51 = arith.constant 0 : index
    %c0_52 = arith.constant 0 : index
    %86 = vector.load %arg8[%c0_51, %c0_52] : memref<1x32xf32, #tpu.memory_space<vmem>>, vector<1x32xf32>
    %87 = vector.broadcast %86 : vector<1x32xf32> to vector<8x32xf32>
    %88 = arith.addf %85, %87 : vector<8x32xf32>
    %89 = vector.shape_cast %88 : vector<8x32xf32> to vector<1x8x32xf32>
    %c0_53 = arith.constant 0 : index
    %c0_54 = arith.constant 0 : index
    %c0_55 = arith.constant 0 : index
    %90 = vector.load %arg9[%c0_53, %c0_54, %c0_55] : memref<1x8x32xf32, #tpu.memory_space<vmem>>, vector<1x8x32xf32>
    tpu.vector_store %arg9[%c0_53, %c0_54, %c0_55], %89 {strides = array<i32>} : memref<1x8x32xf32, #tpu.memory_space<vmem>>, vector<1x8x32xf32>,
    return
  }
  func.func @transform_0(%arg0: i32) -> (i32, i32, i32) {
    %c0_i32 = arith.constant 0 : i32
    %c0_i32_0 = arith.constant 0 : i32
    %c0_i32_1 = arith.constant 0 : i32
    return %arg0, %c0_i32, %c0_i32_0 : i32, i32, i32
  }
  func.func @transform_1(%arg0: i32) -> (i32, i32, i32) {
    %c0_i32 = arith.constant 0 : i32
    %c0_i32_0 = arith.constant 0 : i32
    %c0_i32_1 = arith.constant 0 : i32
    %c0_i32_2 = arith.constant 0 : i32
    return %c0_i32, %c0_i32_0, %c0_i32_1 : i32, i32, i32
  }
  func.func @transform_2(%arg0: i32) -> (i32, i32, i32) {
    %c0_i32 = arith.constant 0 : i32
    %c0_i32_0 = arith.constant 0 : i32
    %c0_i32_1 = arith.constant 0 : i32
    %c0_i32_2 = arith.constant 0 : i32
    return %c0_i32, %c0_i32_0, %c0_i32_1 : i32, i32, i32
  }
  func.func @transform_3(%arg0: i32) -> (i32, i32, i32) {
    %c0_i32 = arith.constant 0 : i32
    %c0_i32_0 = arith.constant 0 : i32
    %c0_i32_1 = arith.constant 0 : i32
    %c0_i32_2 = arith.constant 0 : i32
    return %c0_i32, %c0_i32_0, %c0_i32_1 : i32, i32, i32
  }
  func.func @transform_4(%arg0: i32) -> (i32, i32, i32) {
    %c0_i32 = arith.constant 0 : i32
    %c0_i32_0 = arith.constant 0 : i32
    %c0_i32_1 = arith.constant 0 : i32
    %c0_i32_2 = arith.constant 0 : i32
    return %c0_i32, %c0_i32_0, %c0_i32_1 : i32, i32, i32
  }
  func.func @transform_5(%arg0: i32) -> (i32, i32) {
    %c0_i32 = arith.constant 0 : i32
    %c0_i32_0 = arith.constant 0 : i32
    %c0_i32_1 = arith.constant 0 : i32
    return %c0_i32, %c0_i32_0 : i32, i32
  }
  func.func @transform_6(%arg0: i32) -> (i32, i32) {
    %c0_i32 = arith.constant 0 : i32
    %c0_i32_0 = arith.constant 0 : i32
    %c0_i32_1 = arith.constant 0 : i32
    return %c0_i32, %c0_i32_0 : i32, i32
  }
  func.func @transform_7(%arg0: i32) -> (i32, i32) {
    %c0_i32 = arith.constant 0 : i32
    %c0_i32_0 = arith.constant 0 : i32
    %c0_i32_1 = arith.constant 0 : i32
    return %c0_i32, %c0_i32_0 : i32, i32
  }
  func.func @transform_8(%arg0: i32) -> (i32, i32, i32) {
    %c0_i32 = arith.constant 0 : i32
    %c0_i32_0 = arith.constant 0 : i32
    %c0_i32_1 = arith.constant 0 : i32
    return %arg0, %c0_i32, %c0_i32_0 : i32, i32, i32
  }
}

</mosaic_0001>

<bundles_post_ra>
// kernel: tpu_custom_call.1
= control target key start
LH: loop header
LB: loop body
LE: loop exit
PB: predicated region body
PF: predicated region fallthrough
CT: control target
= control target key end

     0   :  { %13 = vsyncpa [#allocation3], 0  ;;  %s1954_s0 = inlined_call_operand.vmem [shape: f32[2,8,32], index: 0, kind: input, shape index: {}]   ;;  %s1955_s1 = inlined_call_operand.vmem [shape: f32[2,32,16], index: 1, kind: input, shape index: {}]   ;;  %s1956_s2 = inlined_call_operand.vmem [shape: f32[2,32,16], index: 2, kind: input, shape index: {}]   ;;  %s1957_s3 = inlined_call_operand.vmem [shape: f32[2,32,16], index: 3, kind: input, shape index: {}]   ;;  %s1958_s4 = inlined_call_operand.vmem [shape: f32[2,16,32], index: 4, kind: input, shape index: {}]   ;;  %s1959_s5 = inlined_call_operand.vmem [shape: f32[1,32], index: 5, kind: input, shape index: {}]   ;;  %s1960_s6 = inlined_call_operand.vmem [shape: f32[1,32], index: 6, kind: input, shape index: {}]   ;;  %s1961_s7 = inlined_call_operand.vmem [shape: f32[1,32], index: 7, kind: input, shape index: {}]   ;;  %s1962_s8 = inlined_call_operand.hbm [shape: f32[2,8,32], index: 8, kind: output, shape index: {}]  }
   0x1   :  { %15 = vsyncpa [#allocation3 + $0x1], 0  ;;  %s1688_s27 = smov 0   ;;  %s1690_s28 = smov 0  }
   0x2   :  { %s1692_s29 = smov 0   ;;  %s1694_s30 = smov 0  }
   0x3 LB: > { %s1709_s9 = sadd.s32 4294967295, %s1638_s30   ;;  %s1342_s10 = sadd.s32 4294967294, %s1638_s30   ;;  %s1638_s30 = sphi %s1694_s30, %s1968_s30   ;;  %s1634_s29 = sphi %s1692_s29, %s1967_s29   ;;  %s1630_s28 = sphi %s1690_s28, %s1966_s28   ;;  %s1626_s27 = sphi %s1688_s27, %s1965_s27  }
   0x4   : > { %s1713_s11 = sadd.s32 1, %s1638_s30   ;;  %s201_s12 = sadd.s32 1, %s1634_s29 }
   0x5   : > { %s198_s13 = ssub.s32 %s1638_s30, %s1713_s11  ;;  %p211_p0 = scmp.ne.s32.totalorder %s1634_s29, %s1630_s28 }
   0x6   : > { %p199_p1 = scmp.eq.s32.totalorder %s198_s13, 0  ;;  %p212_p2 = scmp.eq.s32.totalorder %s1709_s9, 1 }
   0x7   : > { %p217_p3 = scmp.ne.s32.totalorder %s1630_s28, %s1626_s27  ;;  %p218_p4 = scmp.eq.s32.totalorder %s1342_s10, 1 }
   0x8   : > { %s1724_s14 = scalar_select %p199_p1, %s1634_s29, %s201_s12  }
   0x9   : > { %p1726_p5 = por %p212_p2, %p211_p0  ;;  %p1730_p6 = por %p218_p4, %p217_p3 }
   0xa   : > { %p1345_p7 = scmp.ge.s32.totalorder %s1638_s30, 1  ;;  %p264_p8 = scmp.lt.s32.totalorder %s1638_s30, 3 }
   0xc   : > { %p265_p9 = pnand %p1345_p7, %p264_p8 }
   0xd   : > { %p297_p10 = scmp.lt.s32.totalorder (!%p265_p9), %s1709_s9, 1  ;;  %s294_s12 = sand.u32 (!%p265_p9), 1, %s1630_s28  }
   0xe   : > { %268 = sbr.rel (%p265_p9) target bundleno = 2345 (0x929), region = 52  ;;  %s1346_s13 = sshll.u32 (!%p265_p9), %s294_s12, 3 }
   0xf   : > { %s1380_s21 = sshll.u32 (!%p265_p9), %s1709_s9, 7  ;;  %s1270_s10 = scalar_lea.sflag (!%p265_p9), [#allocation3], %s294_s12 }
  0x10   : > { %s1281_s26 = scalar_lea.hbm (!%p265_p9), %s1962_s8, %s1380_s21  ;;  %s1642_s18 = smov (!%p265_p9), [#allocation2]  }
  0x11   : > { %s1582_s19 = sshll.u32 (!%p265_p9), %s1642_s18, 4  ;;  %s1583_s19 = int_to_ptr.vmem [resolvable:$false] %s1582_s19 }
  0x13   : > { %v391_v0 = vld [vmem:[%s1956_s2 + $0x18] sm:$0xff]  ;;  %v1640_v2 = vmov 0.0   ;;  %v390_v3 = vld [vmem:[%s1956_s2 + $0x10] sm:$0xff]  ;;  %s298_s25 = scalar_select %p297_p10, %s1709_s9, 1  ;;  %v389_v5 = vld [vmem:[%s1956_s2 + $0x8] sm:$0xff]  ;;  %vm314_vm0 = vcmask 261120  }
  0x14   : > { %v313_v1 = vld [vmem:[%s1955_s1 + $0x18] sm:$0xff]  ;;  %1438 = vmatprep.subr.mxu1 %v1640_v2  ;;  %1427 = vmatprep.subr.mxu0 %v1640_v2  ;;  %v312_v4 = vld [vmem:[%s1955_s1 + $0x10] sm:$0xff]  ;;  %v311_v6 = vld [vmem:[%s1955_s1 + $0x8] sm:$0xff]  ;;  %vm1641_vm1 = vmmov 0   ;;  %vm536_vm2 = vcmask 130048   ;;  %vm614_vm3 = vcmask 64512  }
  0x15   : > { %1439 = vmatpush3.msra.mxu1 %v391_v0  ;;  %1428 = vmatpush3.msra.mxu0 %v313_v1  ;;  %s1347_s17 = sshll.u32 %s298_s25, 3  ;;  %v388_v7 = vld [vmem:[%s1956_s2] sm:$0xff]  ;;  %v465_v14 = vld [vmem:[%s1957_s3 + $0x18] sm:$0xff]  ;;  %v464_v15 = vld [vmem:[%s1957_s3 + $0x10] sm:$0xff]  ;;  %s1584_s9 = scalar_lea.vmem %s1583_s19, 256 }
  0x16   : > { %1440 = vmatprep.subr.mxu1 %v1640_v2  ;;  %1429 = vmatprep.subr.mxu0 %v1640_v2  ;;  %s300_s22 = scalar_lea.vmem %s1954_s0, %s1347_s17  ;;  %v310_v8 = vld [vmem:[%s1955_s1] sm:$0xff]  ;;  %v463_v16 = vld [vmem:[%s1957_s3 + $0x8] sm:$0xff]  ;;  %v1359_v34 = vld [vmem:[%s1955_s1 + $0x38] sm:$0xff] }
  0x17   : > { %1441 = vmatpush3.msra.mxu1 %v390_v3  ;;  %1430 = vmatpush3.msra.mxu0 %v312_v4  ;;  %v1773_v9 = vld [vmem:[%s300_s22] sm:$0xff]  ;;  %v700_v29 = vld [vmem:[%s1958_s4 + $0x8] sm:$0xff]  ;;  %v1358_v35 = vld [vmem:[%s1955_s1 + $0x30] sm:$0xff]  ;;  %s296_s22 = scalar_lea.vmem [#allocation2], %s1346_s13 }
  0x18   : > { %1442 = vmatprep.subr.mxu1 %v1640_v2  ;;  %1431 = vmatprep.subr.mxu0 %v1640_v2  ;;  %v462_v17 = vld [vmem:[%s1957_s3] sm:$0xff]  ;;  %v1357_v36 = vld [vmem:[%s1955_s1 + $0x28] sm:$0xff]  ;;  %v1364_v38 = vld [vmem:[%s1956_s2 + $0x38] sm:$0xff]  ;;  %s1283_s23 = sshll.u32 %s296_s22, 4  ;;  %s1284_s23 = int_to_ptr.vmem [resolvable:$true] %s1283_s23 }
  0x19   : > { %1443 = vmatpush3.msra.mxu1 %v389_v5  ;;  %1432 = vmatpush3.msra.mxu0 %v311_v6  ;;  %v699_v30 = vld [vmem:[%s1958_s4] sm:$0xff]  ;;  %v1363_v40 = vld [vmem:[%s1956_s2 + $0x30] sm:$0xff]  ;;  %v1362_v42 = vld [vmem:[%s1956_s2 + $0x28] sm:$0xff]  ;;  %s1578_s17 = scalar_lea.vmem %s1284_s23, 128  ;;  %p1585_p0 = scmp.lt.s32.totalorder %s1284_s23, %s1583_s19 }
  0x1a   : > { %1444 = vmatprep.subr.mxu1 %v1640_v2  ;;  %1433 = vmatprep.subr.mxu0 %v1640_v2  ;;  %v1356_v37 = vld [vmem:[%s1955_s1 + $0x20] sm:$0xff]  ;;  %v1369_v50 = vld [vmem:[%s1957_s3 + $0x38] sm:$0xff]  ;;  %v1368_v51 = vld [vmem:[%s1957_s3 + $0x30] sm:$0xff]  ;;  %p1579_p11 = scmp.ne.s32.totalorder %s1284_s23, %s1578_s17  ;;  %p1586_p1 = scmp.lt.s32.totalorder %s1584_s9, %s1578_s17 }
  0x1b   : > { %1445 = vmatpush3.msra.mxu1 %v388_v7  ;;  %1446 = vmatprep.mubr.msk.f32.mxu1 %vm1641_vm1, %v1640_v2  ;;  %v1361_v43 = vld [vmem:[%s1956_s2 + $0x20] sm:$0xff]  ;;  %v1367_v52 = vld [vmem:[%s1957_s3 + $0x28] sm:$0xff]  ;;  %v1375_v1 = vld [vmem:[%s1958_s4 + $0x18] sm:$0xff] }
  0x1c   : > { %1434 = vmatpush3.msra.mxu0 %v310_v8  ;;  %1435 = vmatprep.mubr.msk.f32.mxu0 %vm1641_vm1, %v1640_v2  ;;  %v1366_v53 = vld [vmem:[%s1957_s3 + $0x20] sm:$0xff]  ;;  %v1374_v6 = vld [vmem:[%s1958_s4 + $0x10] sm:$0xff]  ;;  %p1580_p12 = pnand %p1579_p11, %p1726_p5  ;;  %p1587_p2 = por %p1586_p1, %p1585_p0 }
  0x1d   : > { %1447 = vmatmul.mubr.msk.f32.vlgmr.msra.gmra.mxu1 %vm314_vm0, %v1773_v9  ;;  %1436 = vmatmul.mubr.msk.f32.vlgmr.msra.gmra.mxu0 %vm314_vm0, %v1773_v9 }
  0x1e   : > { %1460 = vmatprep.subr.mxu1 %v1640_v2  ;;  %1462 = vmatprep.mubr.msk.f32.mxu1 %vm1641_vm1, %v1640_v2  ;;  %p1581_p13 = pneg %p1580_p12 }
  0x1f   : > { %1449 = vmatprep.subr.mxu0 %v1640_v2  ;;  %1457 = vmatprep.mubr.msk.f32.mxu0 %vm1641_vm1, %v1640_v2 }
  0x20   : > { %1450 = vmatpush3.msra.mxu0 %v465_v14  ;;  %p1588_p3 = pnand %p1587_p2, %p1581_p13 }
  0x21   : > { %1451 = vmatprep.subr.mxu0 %v1640_v2 }
  0x22   : > { %1452 = vmatpush3.msra.mxu0 %v464_v15 }
  0x23   : > { %1453 = vmatprep.subr.mxu0 %v1640_v2 }
  0x24   : > { %1454 = vmatpush3.msra.mxu0 %v463_v16 }
  0x25   : > { %1455 = vmatprep.subr.mxu0 %v1640_v2 }
  0x26   : > { %1456 = vmatpush3.msra.mxu0 %v462_v17 }
  0x27   : > { %1458 = vmatmul.mubr.msk.f32.vlgmr.msra.gmra.mxu0 %vm314_vm0, %v1773_v9  ;;  %1470 = vmatprep.subr.mxu0 %v1640_v2 }
  0x28   : > { %1474 = vmatprep.mubr.msk.f32.mxu0 %vm1641_vm1, %v1640_v2  ;;  %1471 = vmatpush3.msra.mxu0 %v700_v29 }
  0x29   : > { %1472 = vmatprep.subr.mxu0 %v1640_v2 }
  0x2a   : > { %1473 = vmatpush3.msra.mxu0 %v699_v30 }
  0x2b   : > { %1488 = vmatprep.subr.mxu0 %v1640_v2 }
  0xdd   : > { %v458_v10 = vpop.f32.mrf.mxu1  ;;  %v384_v11 = vpop.f32.mrf.mxu0 }
  0xde   : > { %1461 = vmatpush3.xpose.msk.msra.mxu1 %vm536_vm2, %v458_v10  ;;  %v1348_v10 = vld [vmem:[%s1959_s5] ss:$0 sm:$0xff] }
  0xdf   : > { %v1448_v12 = vpop.f32.mrf.mxu1  ;;  %v1437_v13 = vpop.f32.mrf.mxu0  ;;  %1465 = vmatprep.subr.mxu1 %v1640_v2 }
  0xe1   : > { %1463 = vmatmul.mubr.msk.f32.vlgmr.msra.gmra.mxu1 %vm536_vm2, %v384_v11 }
  0xe2   : > { %1467 = vmatprep.mubr.msk.f32.mxu1 %vm1641_vm1, %v1640_v2 }
  0xe7   : > { %v532_v27 = vpop.f32.mrf.mxu0 }
  0xe8   : > { %1466 = vmatpush3.msra.mxu1 %v532_v27 }
  0xe9   : > { %v1459_v28 = vpop.f32.mrf.mxu0  ;;  %1477 = vmatprep.subr.mxu1 %v1640_v2 }
 0x1a1   : > { %v609_v18 = vpop.f32.mrf.mxu1 }
 0x1a2   : > { %v613_v19 = vmul.f32 0.25, %v609_v18 }
 0x1a3   : > { %v1464_v20 = vpop.f32.mrf.mxu1 }
 0x1a4   : > { %v615_v21 = vsel %vm614_vm3, %v613_v19, -inf }
 0x1a5   : > { %616 = vmax.xlane.f32.xlu0 %v615_v21 }
 0x22e   : > { %v617_v22 = vpop.xlane.xlu0 %616 }
 0x22f   : > { %v618_v23 = vsub.f32 %v613_v19, %v617_v22 }
 0x231   : > { %v619_v24 = vmul.f32 1.442695, %v618_v23 }
 0x233   : > { %1568 = vpow2.f32 %v619_v24  ;;  %v1377_v24 = vld [vmem:[%s1960_s6] ss:$0 sm:$0xff] }
 0x240   : > { %v1569_v25 = vpop.eup %1568 }
 0x241   : > { %v621_v26 = vsel %vm614_vm3, %v1569_v25, 0.0 }
 0x242   : > { %622 = vadd.xlane.f32.xlu0 %v621_v26  ;;  %v1378_v26 = vld [vmem:[%s1961_s7] ss:$0 sm:$0xff] }
 0x2cb   : > { %v623_v31 = vpop.xlane.xlu0 %622 }
 0x2cc   : > { %1570 = vrcp.f32 %v623_v31 }
 0x2d9   : > { %v1571_v32 = vpop.eup %1570 }
 0x2da   : > { %v625_v33 = vmul.f32 %v1571_v32, %v1569_v25 }
 0x2dc   : > { %1468 = vmatmul.mubr.msk.f32.vlgmr.msra.gmra.mxu1 %vm614_vm3, %v625_v33 }
 0x2dd   : > { %1485 = vmatprep.mubr.msk.f32.mxu1 %vm1641_vm1, %v1640_v2  ;;  %1478 = vmatpush3.msra.mxu1 %v1359_v34 }
 0x2de   : > { %1479 = vmatprep.subr.mxu1 %v1640_v2 }
 0x2df   : > { %1480 = vmatpush3.msra.mxu1 %v1358_v35 }
 0x2e0   : > { %1481 = vmatprep.subr.mxu1 %v1640_v2 }
 0x2e1   : > { %1482 = vmatpush3.msra.mxu1 %v1357_v36 }
 0x2e2   : > { %1483 = vmatprep.subr.mxu1 %v1640_v2 }
 0x2e3   : > { %1484 = vmatpush3.msra.mxu1 %v1356_v37 }
 0x2e4   : > { %1486 = vmatmul.mubr.msk.f32.vlgmr.msra.gmra.mxu1 %vm314_vm0, %v1773_v9  ;;  %1499 = vmatprep.subr.mxu1 %v1640_v2 }
 0x2e5   : > { %1507 = vmatprep.mubr.msk.f32.mxu1 %vm1641_vm1, %v1640_v2  ;;  %1500 = vmatpush3.msra.mxu1 %v1369_v50 }
 0x2e6   : > { %1501 = vmatprep.subr.mxu1 %v1640_v2 }
 0x2e7   : > { %1502 = vmatpush3.msra.mxu1 %v1368_v51 }
 0x2e8   : > { %1503 = vmatprep.subr.mxu1 %v1640_v2 }
 0x2e9   : > { %1504 = vmatpush3.msra.mxu1 %v1367_v52 }
 0x2ea   : > { %1505 = vmatprep.subr.mxu1 %v1640_v2 }
 0x2eb   : > { %1506 = vmatpush3.msra.mxu1 %v1366_v53 }
 0x2ec   : > { %1508 = vmatmul.mubr.msk.f32.vlgmr.msra.gmra.mxu1 %vm314_vm0, %v1773_v9  ;;  %1520 = vmatprep.subr.mxu1 %v1640_v2 }
 0x2ed   : > { %1524 = vmatprep.mubr.msk.f32.mxu1 %vm1641_vm1, %v1640_v2  ;;  %1521 = vmatpush3.msra.mxu1 %v1375_v1 }
 0x2ee   : > { %1522 = vmatprep.subr.mxu1 %v1640_v2 }
 0x2ef   : > { %1523 = vmatpush3.msra.mxu1 %v1374_v6 }
 0x39c   : > { %v695_v39 = vpop.f32.mrf.mxu1 }
 0x39d   : > { %1475 = vmatmul.mubr.msk.f32.vlgmr.msra.gmra.mxu0 %vm536_vm2, %v695_v39 }
 0x39e   : > { %1489 = vmatpush3.msra.mxu0 %v1364_v38  ;;  %v1469_v41 = vpop.f32.mrf.mxu1  ;;  %1496 = vmatprep.mubr.msk.f32.mxu0 %vm1641_vm1, %v1640_v2 }
 0x39f   : > { %1490 = vmatprep.subr.mxu0 %v1640_v2 }
 0x3a0   : > { %1491 = vmatpush3.msra.mxu0 %v1363_v40 }
 0x3a1   : > { %1492 = vmatprep.subr.mxu0 %v1640_v2 }
 0x3a2   : > { %1493 = vmatpush3.msra.mxu0 %v1362_v42 }
 0x3a3   : > { %1494 = vmatprep.subr.mxu0 %v1640_v2 }
 0x3a4   : > { %1495 = vmatpush3.msra.mxu0 %v1361_v43  ;;  %v846_v44 = vpop.f32.mrf.mxu1 }
 0x3a5   : > { %1497 = vmatmul.mubr.msk.f32.vlgmr.msra.gmra.mxu0 %vm314_vm0, %v1773_v9  ;;  %1510 = vmatprep.subr.mxu0 %v1640_v2 }
 0x3a6   : > { %1512 = vmatprep.mubr.msk.f32.mxu0 %vm1641_vm1, %v1640_v2  ;;  %v1487_v45 = vpop.f32.mrf.mxu1 }
 0x3ac   : > { %v996_v63 = vpop.f32.mrf.mxu1 }
 0x3ae   : > { %v1509_v0 = vpop.f32.mrf.mxu1 }
 0x45d   : > { %v770_v46 = vpop.f32.mrf.mxu0 }
 0x45f   : > { %v1476_v47 = vpop.f32.mrf.mxu0 }
 0x465   : > { %v921_v48 = vpop.f32.mrf.mxu0 }
 0x466   : > { %1511 = vmatpush3.xpose.msk.msra.mxu0 %vm536_vm2, %v921_v48 }
 0x467   : > { %v1498_v49 = vpop.f32.mrf.mxu0  ;;  %1515 = vmatprep.subr.mxu0 %v1640_v2 }
 0x469   : > { %1513 = vmatmul.mubr.msk.f32.vlgmr.msra.gmra.mxu0 %vm536_vm2, %v846_v44 }
 0x46a   : > { %1517 = vmatprep.mubr.msk.f32.mxu0 %vm1641_vm1, %v1640_v2  ;;  %1516 = vmatpush3.msra.mxu0 %v996_v63  ;;  %v309_v2 = vadd.f32 %v1348_v10, %v1773_v9 }
 0x46c   : > { %v774_v11 = vadd.f32 %v770_v46, %v309_v2 }
 0x529   : > { %v1072_v54 = vpop.f32.mrf.mxu0 }
 0x52a   : > { %v1076_v55 = vmul.f32 0.25, %v1072_v54 }
 0x52b   : > { %v1514_v56 = vpop.f32.mrf.mxu0 }
 0x52c   : > { %v1077_v57 = vsel %vm614_vm3, %v1076_v55, -inf }
 0x52d   : > { %1078 = vmax.xlane.f32.xlu1 %v1077_v57 }
 0x5b6   : > { %v1079_v58 = vpop.xlane.xlu1 %1078 }
 0x5b7   : > { %v1080_v59 = vsub.f32 %v1076_v55, %v1079_v58 }
 0x5b9   : > { %v1081_v60 = vmul.f32 1.442695, %v1080_v59 }
 0x5bb   : > { %1572 = vpow2.f32 %v1081_v60 }
 0x5c8   : > { %v1573_v61 = vpop.eup %1572 }
 0x5c9   : > { %v1083_v62 = vsel %vm614_vm3, %v1573_v61, 0.0 }
 0x5ca   : > { %1084 = vadd.xlane.f32.xlu1 %v1083_v62 }
 0x653   : > { %v1085_v3 = vpop.xlane.xlu1 %1084 }
 0x654   : > { %1574 = vrcp.f32 %v1085_v3 }
 0x661   : > { %v1575_v4 = vpop.eup %1574 }
 0x662   : > { %v1087_v5 = vmul.f32 %v1575_v4, %v1573_v61 }
 0x664   : > { %1518 = vmatmul.mubr.msk.f32.vlgmr.msra.gmra.mxu0 %vm614_vm3, %v1087_v5 }
 0x724   : > { %v1157_v7 = vpop.f32.mrf.mxu0 }
 0x725   : > { %1525 = vmatmul.mubr.msk.f32.vlgmr.msra.gmra.mxu1 %vm536_vm2, %v1157_v7 }
 0x726   : > { %v1519_v8 = vpop.f32.mrf.mxu0 }
 0x7e5   : > { %v1233_v12 = vpop.f32.mrf.mxu1 }
 0x7e6   : > { %v1237_v13 = vadd.f32 %v1233_v12, %v774_v11 }
 0x7e7   : > { %v1526_v14 = vpop.f32.mrf.mxu1 }
 0x7e8   : > { %v1238_v15 = vsel %vm314_vm0, %v1237_v13, 0.0 }
 0x7e9   : > { %1239 = vadd.xlane.f32.xlu0 %v1238_v15 }
 0x872   : > { %v1240_v16 = vpop.xlane.xlu0 %1239 }
 0x873   : > { %v1242_v17 = vmul.f32 0.03125, %v1240_v16 }
 0x875   : > { %v1243_v18 = vsub.f32 %v1237_v13, %v1242_v17 }
 0x877   : > { %v1244_v19 = vmul.f32 %v1243_v18, %v1243_v18 }
 0x879   : > { %v1245_v20 = vsel %vm314_vm0, %v1244_v19, 0.0 }
 0x87a   : > { %1246 = vadd.xlane.f32.xlu1 %v1245_v20 }
 0x903   : > { %v1247_v21 = vpop.xlane.xlu1 %1246 }
 0x904   : > { %v1248_v22 = vmul.f32 0.03125, %v1247_v21 }
 0x906   : > { %v1249_v23 = vadd.f32 1e-05, %v1248_v22 }
 0x908   : > { %1576 = vrsqrt.f32 %v1249_v23 }
 0x915   : > { %v1577_v9 = vpop.eup %1576 }
 0x916   : > { %v1251_v25 = vmul.f32 %v1577_v9, %v1243_v18 }
 0x918   : > { %v1259_v27 = vmul.f32 %v1377_v24, %v1251_v25 }
 0x91a   : > { %v1267_v28 = vadd.f32 %v1378_v26, %v1259_v27 }
 0x91c   : > { %1268 = vst.msk [vmem:[%s296_s22] sm:$0xff] %vm314_vm0, %v1267_v28 }
 0x91d   : > { %1591 = shalt.err (!%p1588_p3)
}
 0x91e   : > { %s1592_s13 = scalar_lea.hbm %s1281_s26, 128  ;;  %s1596_s21 = scalar_lea.hbm %s1962_s8, 256 }
 0x91f   : > { %p1593_p4 = scmp.ne.s32.totalorder %s1281_s26, %s1592_s13  ;;  %p1597_p9 = scmp.lt.s32.totalorder %s1281_s26, %s1962_s8 }
 0x920   : > { %p1598_p10 = scmp.lt.s32.totalorder %s1596_s21, %s1592_s13 }
 0x921   : > { %p1594_p7 = pnand %p1593_p4, %p1726_p5 }
 0x922   : > { %p1599_p11 = por %p1598_p10, %p1597_p9 }
 0x923   : > { %p1595_p8 = pneg %p1594_p7 }
 0x925   : > { %p1600_p12 = pnand %p1599_p11, %p1595_p8 }
 0x927   : > { %1603 = shalt.err (!%p1600_p12)
}
 0x928   : > { %1527 = dma.vmem_to_hbm [thread:$0]  (%p1726_p5), %s1284_s23, 128, %s1281_s26, %s1270_s10  }
 0x929 PF: > { %p1533_p13 = scmp.ge.s32.totalorder %s1638_s30, 2  ;;  %s1295_s25 = sand.u32 1, %s1626_s27  }
 0x92a   : > { %s1296_s17 = scalar_lea.sflag [#allocation3], %s1295_s25 }
 0x92b   : > { %p1530_p0 = pnand %p1533_p13, %p1730_p6 }
 0x92d   : > { %p1531_p1 = pneg %p1530_p0 }
 0x92f   : > { %1621 = dma.done.wait (%p1531_p1), %s1296_s17, 128  }
 0x930   : > { %1623 = vsyncadd (%p1531_p1), %s1296_s17, 4294967168  ;;  %p18_p2 = scmp.ge.s32.totalorder %s1713_s11, 4   ;;  %s1965_s27 = smov %s1630_s28 }
 0x931   : > { %s1966_s28 = smov %s1634_s29  ;;  %s1967_s29 = smov %s1724_s14 }
 0x932   : > { %s1968_s30 = smov %s1713_s11  ;;  %20 = sbr.rel (!%p18_p2) target bundleno = 3 (0x3), region = 91 }
 0x937   :  { %1301 = vsyncpa [#allocation3], 1 }
 0x938   :  { %1303 = vsyncpa [#allocation3 + $0x1], 1 }

</bundles_post_ra>
